<compile_context>
chip_gen: v7x
topology: tpu7x:2x2x1
jax: 0.10.0
libtpu: 0.0.40
codegen_flags: <defaults>
</compile_context>

<pallas_src>
import jax
import jax.numpy as jnp
from jax.experimental import pallas as pl
from jax.experimental.pallas import tpu as pltpu

SEQ_LENGTH = 40


def _pe_add_kernel(x_ref, pe_ref, o_ref):
    # x_ref / o_ref: (Bb, S, N*F) lane-dense block; pe_ref: (S, N*F) pre-broadcast table.
    # pe broadcasts only over the leading batch dim (vreg tiles reused, no XLU work).
    o_ref[...] = x_ref[...] + pe_ref[...]


def _pick_batch_block(B, per_batch_bytes, target_bytes=4 << 20):
    # Largest divisor of B whose x-block stays within ~target_bytes; with
    # double-buffered in+out blocks this remains well under the 32 MiB scoped
    # VMEM default (and v7x's 64 MiB physical VMEM).
    cap = int(max(1, min(B, target_bytes // max(1, per_batch_bytes))))
    for bb in range(cap, 0, -1):
        if B % bb == 0:
            return bb
    return 1


def learned_positional_encoding(x, pe_weight, position_ids=None):
    """x: (B, S, N, F); pe_weight: (seq_length, F).

    out[b, s, n, f] = x[b, s, n, f] + pe_weight[position_ids[s], f]
    (matches PyTorch: x + Embedding(position_ids).transpose(-3, -2)).
    """
    B, S, N, F = x.shape
    if position_ids is None:
        assert S <= pe_weight.shape[0], "sequence length exceeds positional table"
        position_ids = jnp.arange(S, dtype=jnp.int32)
    else:
        # Normalize PyTorch-style (1, S) ids (or any shape) to flat (S,) ids.
        position_ids = jnp.asarray(position_ids).reshape(-1)[:S]

    # Embedding gather + one-time pre-broadcast over N (tiny wrapper-side glue):
    # yields a lane-dense (S, N*F) table so the kernel is a same-layout add.
    pe_rows = jnp.take(pe_weight, position_ids, axis=0).astype(x.dtype)          # (S, F)
    pe_tiled = jnp.broadcast_to(pe_rows[:, None, :], (S, N, F)).reshape(S, N * F)

    NF = N * F
    x2 = x.reshape(B, S, NF)   # lane-dense last dim

    per_batch_bytes = S * NF * jnp.dtype(x.dtype).itemsize
    bb = _pick_batch_block(B, per_batch_bytes)
    grid = (B // bb,)

    out2 = pl.pallas_call(
        _pe_add_kernel,
        out_shape=jax.ShapeDtypeStruct((B, S, NF), x.dtype),
        grid=grid,
        in_specs=[
            pl.BlockSpec((bb, S, NF), lambda i: (i, 0, 0)),
            pl.BlockSpec((S, NF), lambda i: (0, 0)),
        ],
        out_specs=pl.BlockSpec((bb, S, NF), lambda i: (i, 0, 0)),
        compiler_params=pltpu.CompilerParams(
            dimension_semantics=("parallel",),   # shards the batch axis across TCs on v7x
        ),
    )(x2, pe_tiled)
    # TODO(synk): consider input_output_aliases={0: 0} or fusing this add into the
    # adjacent producer/consumer kernel — the standalone op is a pure HBM round-trip.
    return out2.reshape(B, S, N, F)


if __name__ == "__main__":
    key = jax.random.PRNGKey(0)
    k_x, k_w = jax.random.split(key)

    B, S, N, F = 2, SEQ_LENGTH, 8, 32   # feature_number = 32
    x = jax.random.normal(k_x, (B, S, N, F), dtype=jnp.float32)
    # nn.Embedding default init: N(0, 1)
    pe_weight = jax.random.normal(k_w, (SEQ_LENGTH, F), dtype=jnp.float32)

    out = learned_positional_encoding(x, pe_weight)
    out = jax.block_until_ready(out)

    # Pure-JAX reference mirroring the PyTorch forward.
    pos_ids = jnp.arange(SEQ_LENGTH)[None, :SEQ_LENGTH]          # (1, 40)
    pos_emb = pe_weight[pos_ids]                                 # (1, 40, F)
    pos_emb = jnp.swapaxes(pos_emb, -3, -2)                      # (40, 1, F)
    ref = x + pos_emb

    assert out.shape == x.shape and out.dtype == x.dtype
    assert jnp.allclose(out, ref, atol=1e-6), "mismatch vs reference"
    print("KERNEL_OK")
</pallas_src>

<mosaic_0001>
module attributes {stable_mosaic.version = 11 : i64} {
  func.func @_pe_add_kernel(%arg0: i32, %arg1: memref<2x40x256xf32, #tpu.memory_space<vmem>>, %arg2: memref<40x256xf32, #tpu.memory_space<vmem>>, %arg3: memref<2x40x256xf32, #tpu.memory_space<vmem>>) attributes {dimension_semantics = [#tpu.dimension_semantics<parallel>], iteration_bounds = array<i64: 1>, scalar_prefetch = 0 : i64, scratch_operands = 0 : i64, tpu.core_type = #tpu.core_type<tc>, window_params = [{transform_indices = @transform_0, window_bounds = array<i64: 2, 40, 256>}, {pipeline_mode = #tpu.pipeline_mode<synchronous>, transform_indices = @transform_1, window_bounds = array<i64: 40, 256>}, {transform_indices = @transform_2, window_bounds = array<i64: 2, 40, 256>}]} {
    %c0 = arith.constant 0 : index
    %c0_0 = arith.constant 0 : index
    %c0_1 = arith.constant 0 : index
    %0 = vector.load %arg1[%c0, %c0_0, %c0_1] : memref<2x40x256xf32, #tpu.memory_space<vmem>>, vector<2x40x256xf32>
    %c0_2 = arith.constant 0 : index
    %c0_3 = arith.constant 0 : index
    %1 = vector.load %arg2[%c0_2, %c0_3] : memref<40x256xf32, #tpu.memory_space<vmem>>, vector<40x256xf32>
    %2 = vector.shape_cast %1 : vector<40x256xf32> to vector<1x40x256xf32>
    %3 = vector.broadcast %2 : vector<1x40x256xf32> to vector<2x40x256xf32>
    %4 = arith.addf %0, %3 : vector<2x40x256xf32>
    %c0_4 = arith.constant 0 : index
    %c0_5 = arith.constant 0 : index
    %c0_6 = arith.constant 0 : index
    %5 = vector.load %arg3[%c0_4, %c0_5, %c0_6] : memref<2x40x256xf32, #tpu.memory_space<vmem>>, vector<2x40x256xf32>
    tpu.vector_store %arg3[%c0_4, %c0_5, %c0_6], %4 {strides = array<i32>} : memref<2x40x256xf32, #tpu.memory_space<vmem>>, vector<2x40x256xf32>,
    return
  }
  func.func @transform_0(%arg0: i32) -> (i32, i32, i32) {
    %c0_i32 = arith.constant 0 : i32
    %c0_i32_0 = arith.constant 0 : i32
    %c0_i32_1 = arith.constant 0 : i32
    return %arg0, %c0_i32, %c0_i32_0 : i32, i32, i32
  }
  func.func @transform_1(%arg0: i32) -> (i32, i32) {
    %c0_i32 = arith.constant 0 : i32
    %c0_i32_0 = arith.constant 0 : i32
    %c0_i32_1 = arith.constant 0 : i32
    return %c0_i32, %c0_i32_0 : i32, i32
  }
  func.func @transform_2(%arg0: i32) -> (i32, i32, i32) {
    %c0_i32 = arith.constant 0 : i32
    %c0_i32_0 = arith.constant 0 : i32
    %c0_i32_1 = arith.constant 0 : i32
    return %arg0, %c0_i32, %c0_i32_0 : i32, i32, i32
  }
}

</mosaic_0001>

<bundles_post_ra>
// kernel: tpu_custom_call.1
= control target key start
LH: loop header
LB: loop body
LE: loop exit
PB: predicated region body
PF: predicated region fallthrough
CT: control target
= control target key end

     0   :  { %7 = vsyncpa [#allocation3], 0  ;;  %s270_s0 = inlined_call_operand.hbm [shape: f32[2,40,256], index: 0, kind: input, shape index: {}]   ;;  %s271_s1 = inlined_call_operand.hbm [shape: f32[40,256], index: 1, kind: input, shape index: {}]   ;;  %s272_s2 = inlined_call_operand.hbm [shape: f32[2,40,256], index: 2, kind: output, shape index: {}]  }
   0x1   :  { %8 = vsyncpa [#allocation6], 0 }
   0x2   :  { %9 = vsyncpa [#allocation4], 0  ;;  %s205_s9 = smov [#allocation2]   ;;  %s133_s13 = scalar_lea.hbm %s270_s0, 2560 }
   0x3   :  { %s15_s10 = sshll.u32 %s205_s9, 4  ;;  %p134_p0 = scmp.ne.s32.totalorder %s270_s0, %s133_s13  ;;  %s16_s10 = int_to_ptr.vmem [resolvable:$true] %s15_s10 }
   0x4   :  { %p137_p1 = scmp.lt.u32.totalorder %s133_s13, %s270_s0 }
   0x6   :  { %p139_p2 = pnand %p137_p1, %p134_p0 }
   0x8   :  { %142 = shalt.err (!%p139_p2)
}
   0x9   :  { %s143_s18 = scalar_lea.vmem %s16_s10, 2560  ;;  %p148_p4 = scmp.lt.s32.totalorder %s16_s10, %s16_s10 }
   0xa   :  { %p144_p3 = scmp.ne.s32.totalorder %s16_s10, %s143_s18  ;;  %p149_p5 = scmp.lt.s32.totalorder %s143_s18, %s143_s18 }
   0xc   :  { %p150_p6 = por %p149_p5, %p148_p4 }
   0xe   :  { %p151_p7 = pnand %p150_p6, %p144_p3 }
  0x10   :  { %154 = shalt.err (!%p151_p7)
}
  0x11   :  { %s206_s19 = smov 256   ;;  %s207_s20 = smov 16  }
  0x12   :  { %21 = dma.hbm_to_vmem [thread:$0]  %s270_s0, 2560, %s16_s10, [#allocation3], %s206_s19, %s206_s19, %s207_s20  }
  0x13   :  { %s208_s23 = smov [#allocation5]   ;;  %s155_s27 = scalar_lea.hbm %s271_s1, 1280 }
  0x14   :  { %s27_s24 = sshll.u32 %s208_s23, 4  ;;  %p156_p8 = scmp.ne.s32.totalorder %s271_s1, %s155_s27  ;;  %s28_s24 = int_to_ptr.vmem [resolvable:$true] %s27_s24 }
  0x15   :  { %p159_p9 = scmp.lt.u32.totalorder %s155_s27, %s271_s1 }
  0x17   :  { %p161_p10 = pnand %p159_p9, %p156_p8 }
  0x19   :  { %164 = shalt.err (!%p161_p10)
}
  0x1a   :  { %s165_s4 = scalar_lea.vmem %s28_s24, 1280  ;;  %p170_p12 = scmp.lt.s32.totalorder %s28_s24, %s28_s24 }
  0x1b   :  { %p166_p11 = scmp.ne.s32.totalorder %s28_s24, %s165_s4  ;;  %p171_p13 = scmp.lt.s32.totalorder %s165_s4, %s165_s4 }
  0x1d   :  { %p172_p0 = por %p171_p13, %p170_p12 }
  0x1f   :  { %p173_p1 = pnand %p172_p0, %p166_p11 }
  0x21   :  { %176 = shalt.err (!%p173_p1)
}
  0x22   :  { %33 = dma.hbm_to_vmem [thread:$0]  %s271_s1, 1280, %s28_s24, [#allocation6], %s206_s19, %s206_s19, %s207_s20  }
  0x23   :  { %199 = dma.done.wait [#allocation3], 2560  }
  0x24   :  { %200 = vsyncadd [#allocation3], 4294964736 }
  0x25   :  { %201 = dma.done.wait [#allocation6], 1280  }
  0x26   :  { %202 = vsyncadd [#allocation6], 4294966016  ;;  %v40_v0 = vld [vmem:[#allocation2] sm:$0xff]  ;;  %v41_v2 = vld [vmem:[#allocation2 + $0x8] sm:$0xff]  ;;  %s209_s1 = smov [#allocation7]  }
  0x27   :  { %v60_v1 = vld [vmem:[#allocation5] sm:$0xff]  ;;  %v61_v4 = vld [vmem:[#allocation5 + $0x8] sm:$0xff]  ;;  %v42_v5 = vld [vmem:[#allocation2 + $0x10] sm:$0xff]  ;;  %s115_s6 = sshll.u32 %s209_s1, 4  ;;  %s116_s6 = int_to_ptr.vmem [resolvable:$true] %s115_s6 }
  0x28   :  { %v70_v3 = vadd.f32 %v60_v1, %v40_v0  ;;  %v62_v6 = vld [vmem:[#allocation5 + $0x10] sm:$0xff]  ;;  %v71_v7 = vadd.f32 %v61_v4, %v41_v2  ;;  %v43_v9 = vld [vmem:[#allocation2 + $0x18] sm:$0xff]  ;;  %v44_v11 = vld [vmem:[#allocation2 + $0x20] sm:$0xff]  ;;  %s177_s7 = scalar_lea.vmem %s116_s6, 2560  ;;  %p182_p3 = scmp.lt.s32.totalorder %s116_s6, %s116_s6 }
  0x29   :  { %v72_v8 = vadd.f32 %v62_v6, %v42_v5  ;;  %v63_v10 = vld [vmem:[#allocation5 + $0x18] sm:$0xff]  ;;  %v64_v13 = vld [vmem:[#allocation5 + $0x20] sm:$0xff]  ;;  %v45_v14 = vld [vmem:[#allocation2 + $0x28] sm:$0xff]  ;;  %p178_p2 = scmp.ne.s32.totalorder %s116_s6, %s177_s7  ;;  %p183_p4 = scmp.lt.s32.totalorder %s177_s7, %s177_s7 }
  0x2a   :  { %90 = vst [vmem:[#allocation7] sm:$0xff] %v70_v3  ;;  %v73_v12 = vadd.f32 %v63_v10, %v43_v9  ;;  %v65_v15 = vld [vmem:[#allocation5 + $0x28] sm:$0xff]  ;;  %91 = vst [vmem:[#allocation7 + $0x8] sm:$0xff] %v71_v7  ;;  %v74_v16 = vadd.f32 %v64_v13, %v44_v11  ;;  %v46_v18 = vld [vmem:[#allocation2 + $0x30] sm:$0xff] }
  0x2b   :  { %92 = vst [vmem:[#allocation7 + $0x10] sm:$0xff] %v72_v8  ;;  %v75_v17 = vadd.f32 %v65_v15, %v45_v14  ;;  %v66_v19 = vld [vmem:[#allocation5 + $0x30] sm:$0xff]  ;;  %v47_v20 = vld [vmem:[#allocation2 + $0x38] sm:$0xff]  ;;  %v48_v23 = vld [vmem:[#allocation2 + $0x40] sm:$0xff]  ;;  %p184_p5 = por %p183_p4, %p182_p3 }
  0x2c   :  { %93 = vst [vmem:[#allocation7 + $0x18] sm:$0xff] %v73_v12  ;;  %v76_v21 = vadd.f32 %v66_v19, %v46_v18  ;;  %v67_v22 = vld [vmem:[#allocation5 + $0x38] sm:$0xff]  ;;  %v68_v24 = vld [vmem:[#allocation5 + $0x40] sm:$0xff]  ;;  %94 = vst [vmem:[#allocation7 + $0x20] sm:$0xff] %v74_v16 }
  0x2d   :  { %95 = vst [vmem:[#allocation7 + $0x28] sm:$0xff] %v75_v17  ;;  %v77_v25 = vadd.f32 %v67_v22, %v47_v20  ;;  %v78_v26 = vadd.f32 %v68_v24, %v48_v23  ;;  %v49_v27 = vld [vmem:[#allocation2 + $0x48] sm:$0xff]  ;;  %v50_v29 = vld [vmem:[#allocation2 + $0x50] sm:$0xff]  ;;  %v51_v32 = vld [vmem:[#allocation2 + $0x58] sm:$0xff]  ;;  %p185_p6 = pnand %p184_p5, %p178_p2 }
  0x2e   :  { %v69_v28 = vld [vmem:[#allocation5 + $0x48] sm:$0xff]  ;;  %96 = vst [vmem:[#allocation7 + $0x30] sm:$0xff] %v76_v21  ;;  %v80_v31 = vadd.f32 %v60_v1, %v50_v29  ;;  %v52_v33 = vld [vmem:[#allocation2 + $0x60] sm:$0xff]  ;;  %v81_v35 = vadd.f32 %v61_v4, %v51_v32  ;;  %v54_v38 = vld [vmem:[#allocation2 + $0x70] sm:$0xff] }
  0x2f   :  { %v79_v30 = vadd.f32 %v69_v28, %v49_v27  ;;  %v53_v34 = vld [vmem:[#allocation2 + $0x68] sm:$0xff]  ;;  %97 = vst [vmem:[#allocation7 + $0x38] sm:$0xff] %v77_v25  ;;  %98 = vst [vmem:[#allocation7 + $0x40] sm:$0xff] %v78_v26  ;;  %v82_v36 = vadd.f32 %v62_v6, %v52_v33  ;;  %v55_v39 = vld [vmem:[#allocation2 + $0x78] sm:$0xff]  ;;  %v84_v41 = vadd.f32 %v64_v13, %v54_v38 }
  0x30   :  { %v83_v37 = vadd.f32 %v63_v10, %v53_v34  ;;  %v56_v40 = vld [vmem:[#allocation2 + $0x80] sm:$0xff]  ;;  %100 = vst [vmem:[#allocation7 + $0x50] sm:$0xff] %v80_v31  ;;  %v85_v42 = vadd.f32 %v65_v15, %v55_v39  ;;  %v57_v44 = vld [vmem:[#allocation2 + $0x88] sm:$0xff]  ;;  %v58_v45 = vld [vmem:[#allocation2 + $0x90] sm:$0xff] }
  0x31   :  { %99 = vst [vmem:[#allocation7 + $0x48] sm:$0xff] %v79_v30  ;;  %v86_v43 = vadd.f32 %v66_v19, %v56_v40  ;;  %v59_v46 = vld [vmem:[#allocation2 + $0x98] sm:$0xff]  ;;  %101 = vst [vmem:[#allocation7 + $0x58] sm:$0xff] %v81_v35  ;;  %v87_v47 = vadd.f32 %v67_v22, %v57_v44  ;;  %v88_v48 = vadd.f32 %v68_v24, %v58_v45 }
  0x32   :  { %102 = vst [vmem:[#allocation7 + $0x60] sm:$0xff] %v82_v36  ;;  %103 = vst [vmem:[#allocation7 + $0x68] sm:$0xff] %v83_v37  ;;  %v89_v49 = vadd.f32 %v69_v28, %v59_v46 }
  0x33   :  { %104 = vst [vmem:[#allocation7 + $0x70] sm:$0xff] %v84_v41  ;;  %105 = vst [vmem:[#allocation7 + $0x78] sm:$0xff] %v85_v42 }
  0x34   :  { %106 = vst [vmem:[#allocation7 + $0x80] sm:$0xff] %v86_v43  ;;  %107 = vst [vmem:[#allocation7 + $0x88] sm:$0xff] %v87_v47 }
  0x35   :  { %108 = vst [vmem:[#allocation7 + $0x90] sm:$0xff] %v88_v48  ;;  %109 = vst [vmem:[#allocation7 + $0x98] sm:$0xff] %v89_v49 }
  0x36   :  { %188 = shalt.err (!%p185_p6)
}
  0x37   :  { %s189_s10 = scalar_lea.hbm %s272_s2, 2560 }
  0x38   :  { %p190_p7 = scmp.ne.s32.totalorder %s272_s2, %s189_s10  ;;  %p193_p8 = scmp.lt.u32.totalorder %s189_s10, %s272_s2 }
  0x3a   :  { %p195_p9 = pnand %p193_p8, %p190_p7 }
  0x3c   :  { %198 = shalt.err (!%p195_p9)
}
  0x3d   :  { %121 = dma.vmem_to_hbm [thread:$0]  %s116_s6, 2560, %s272_s2, [#allocation4], %s206_s19, %s206_s19, %s207_s20  }
  0x3e   :  { %203 = dma.done.wait [#allocation4], 2560  }
  0x3f   :  { %204 = vsyncadd [#allocation4], 4294964736 }
  0x40   :  { %125 = vsyncpa [#allocation3], 1 }
  0x41   :  { %126 = vsyncpa [#allocation6], 1 }
  0x42   :  { %127 = vsyncpa [#allocation4], 1 }

</bundles_post_ra>
